<compile_context>
chip_gen: v7x
topology: tpu7x:2x2x1
jax: 0.10.0
libtpu: 0.0.40
codegen_flags: <defaults>
</compile_context>

<pallas_src>
import jax
import jax.numpy as jnp
from jax import lax
from jax.experimental import pallas as pl
from jax.experimental.pallas import tpu as pltpu

OUT_SUB = 8  # out_dim (3) padded up to one vreg sublane group


# ---------------------------------------------------------------------------
# Single-tile fast path: whole batch fits one tile; plain softmax over lanes.
# ---------------------------------------------------------------------------
def _single_tile_kernel(x_ref, w1_ref, b1_ref, w2_ref, b2_ref, o_ref):
    # x_ref:(in_dim,B)  w1_ref:(H,in_dim)  b1_ref:(H,1)  w2_ref:(8,H)  b2_ref:(8,1)
    h = jnp.maximum(
        jnp.dot(w1_ref[...], x_ref[...], preferred_element_type=jnp.float32)
        + b1_ref[...], 0.0)                                           # (H, B)
    logits = (jnp.dot(w2_ref[...], h, preferred_element_type=jnp.float32)
              + b2_ref[...])                                          # (8, B)
    m = jnp.max(logits, axis=1, keepdims=True)                        # (8, 1)
    e = jnp.exp(logits - m)
    s = jnp.sum(e, axis=1, keepdims=True)                             # (8, 1)
    o_ref[...] = e * (1.0 / s)        # exact divide: columns sum to 1 exactly


# ---------------------------------------------------------------------------
# Multi-tile path: two-phase grid (online max/sum over batch tiles, then a
# normalize pass that recomputes the cheap matmuls instead of caching logits).
# ---------------------------------------------------------------------------
def _make_two_phase_kernel(B, TB, needs_mask):
    def kernel(x_ref, w1_ref, b1_ref, w2_ref, b2_ref, o_ref, m_sc, s_sc):
        p = pl.program_id(0)   # 0 = accumulate running max/sum, 1 = normalize
        i = pl.program_id(1)   # batch-tile index (TB lanes per tile)

        h = jnp.maximum(
            jnp.dot(w1_ref[...], x_ref[...], preferred_element_type=jnp.float32)
            + b1_ref[...], 0.0)                                       # (H, TB)
        logits = (jnp.dot(w2_ref[...], h, preferred_element_type=jnp.float32)
                  + b2_ref[...])                                      # (8, TB)

        if needs_mask:
            # padded batch columns must not contribute to the dim=0 softmax
            col = lax.broadcasted_iota(jnp.int32, logits.shape, 1)
            logits = jnp.where(i * TB + col < B, logits, -jnp.inf)

        @pl.when(p == 0)
        def _accumulate():
            @pl.when(i == 0)
            def _init():
                m_sc[...] = jnp.full(m_sc.shape, -jnp.inf, m_sc.dtype)
                s_sc[...] = jnp.zeros(s_sc.shape, s_sc.dtype)

            m_old = m_sc[...]
            m_new = jnp.maximum(m_old, jnp.max(logits, axis=1, keepdims=True))
            s_sc[...] = (s_sc[...] * jnp.exp(m_old - m_new)
                         + jnp.sum(jnp.exp(logits - m_new), axis=1, keepdims=True))
            m_sc[...] = m_new

        @pl.when(p == 1)
        def _normalize():
            o_ref[...] = jnp.exp(logits - m_sc[...]) * (1.0 / s_sc[...])

    return kernel


def net_forward(x, w1, b1, w2, b2, *, block_cols=2048):
    """y = softmax(relu(x @ w1 + b1) @ w2 + b2, axis=0); x:(B,6) -> y:(B,3)."""
    B, in_dim = x.shape
    H = w1.shape[-1]
    out_dim = w2.shape[-1]
    f32 = jnp.float32

    # ---- wrapper-side layout plumbing (done once): batch on lanes -----------
    x_t = x.astype(f32).T                                        # (in_dim, B)
    w1_t = w1.astype(f32).T                                      # (H, in_dim)
    b1_c = jnp.reshape(b1.astype(f32), (H, 1))                   # (H, 1)
    w2_t = jnp.zeros((OUT_SUB, H), f32).at[:out_dim, :].set(w2.astype(f32).T)
    b2_c = jnp.zeros((OUT_SUB, 1), f32).at[:out_dim, 0].set(
        jnp.reshape(b2.astype(f32), (-1,)))

    # ---------------- single-tile fast path (intended Acrobot use) -----------
    if B <= block_cols:
        cost = pl.CostEstimate(
            flops=2 * B * (in_dim * H + H * OUT_SUB),
            transcendentals=B * OUT_SUB,
            bytes_accessed=4 * (B * in_dim + OUT_SUB * B
                                + in_dim * H + H + OUT_SUB * H + OUT_SUB),
        )
        out_t = pl.pallas_call(
            _single_tile_kernel,
            out_shape=jax.ShapeDtypeStruct((OUT_SUB, B), f32),
            cost_estimate=cost,
        )(x_t, w1_t, b1_c, w2_t, b2_c)
        return out_t[:out_dim, :].T

    # ---------------- multi-tile streaming path ------------------------------
    TB = max(128, (block_cols // 128) * 128)        # lane-aligned batch tile
    num_tiles = pl.cdiv(B, TB)
    B_pad = num_tiles * TB
    needs_mask = B_pad != B
    if needs_mask:
        x_t = jnp.pad(x_t, ((0, 0), (0, B_pad - B)))

    cost = pl.CostEstimate(
        flops=2 * 2 * B_pad * (in_dim * H + H * OUT_SUB),   # logits recomputed in phase 1
        transcendentals=2 * B_pad * OUT_SUB,
        bytes_accessed=4 * (2 * B_pad * in_dim + OUT_SUB * B_pad
                            + in_dim * H + H + OUT_SUB * H + OUT_SUB),
    )

    kernel = _make_two_phase_kernel(B, TB, needs_mask)

    out_t = pl.pallas_call(
        kernel,
        out_shape=jax.ShapeDtypeStruct((OUT_SUB, B_pad), f32),
        grid_spec=pltpu.PrefetchScalarGridSpec(
            num_scalar_prefetch=0,
            grid=(2, num_tiles),
            in_specs=[
                # x: streamed per tile in BOTH phases (phase-1 recompute)
                pl.BlockSpec((in_dim, TB), lambda p, i: (0, i)),
                # weights / biases: constant index -> DMA'd once, VMEM-resident
                pl.BlockSpec((H, in_dim), lambda p, i: (0, 0)),
                pl.BlockSpec((H, 1), lambda p, i: (0, 0)),
                pl.BlockSpec((OUT_SUB, H), lambda p, i: (0, 0)),
                pl.BlockSpec((OUT_SUB, 1), lambda p, i: (0, 0)),
            ],
            # output block index only advances in phase 1 -> no stale phase-0
            # writebacks to HBM
            out_specs=pl.BlockSpec((OUT_SUB, TB), lambda p, i: (0, i * p)),
            scratch_shapes=[
                pltpu.VMEM((OUT_SUB, 1), jnp.float32),   # running per-row max
                pltpu.VMEM((OUT_SUB, 1), jnp.float32),   # running per-row sum
            ],
        ),
        compiler_params=pltpu.CompilerParams(
            # both axes coupled (phase ordering + cross-tile softmax reduction)
            dimension_semantics=("arbitrary", "arbitrary")),
        cost_estimate=cost,
    )(x_t, w1_t, b1_c, w2_t, b2_c)

    return out_t[:out_dim, :B].T


def init_params(key, in_dim=6, neurons=32, out_dim=3):
    # PyTorch default Linear init: uniform(-1/sqrt(fan_in), 1/sqrt(fan_in)).
    k1, k2, k3, k4 = jax.random.split(key, 4)
    bound1 = 1.0 / jnp.sqrt(in_dim)
    bound2 = 1.0 / jnp.sqrt(neurons)
    w1 = jax.random.uniform(k1, (in_dim, neurons), jnp.float32, -bound1, bound1)
    b1 = jax.random.uniform(k2, (neurons,), jnp.float32, -bound1, bound1)
    w2 = jax.random.uniform(k3, (neurons, out_dim), jnp.float32, -bound2, bound2)
    b2 = jax.random.uniform(k4, (out_dim,), jnp.float32, -bound2, bound2)
    return w1, b1, w2, b2


if __name__ == "__main__":
    key = jax.random.PRNGKey(0)
    kp, kx1, kx2 = jax.random.split(key, 3)

    in_dim, neurons, out_dim = 6, 32, 3
    w1, b1, w2, b2 = init_params(kp, in_dim, neurons, out_dim)

    def reference(x):
        h = jnp.maximum(x @ w1 + b1, 0.0)
        return jax.nn.softmax(h @ w2 + b2, axis=0)

    # 1) small batch, single-tile fast path (the module's intended use)
    x_small = jax.random.normal(kx1, (8, in_dim), jnp.float32)
    out_small = net_forward(x_small, w1, b1, w2, b2)
    jax.block_until_ready(out_small)
    assert out_small.shape == (8, out_dim)
    assert bool(jnp.allclose(out_small, reference(x_small), atol=5e-3))
    assert bool(jnp.allclose(jnp.sum(out_small, axis=0),
                             jnp.ones((out_dim,)), atol=1e-3))

    # 2) multi-tile path: exercises the cross-tile online-softmax accumulator,
    #    the phase-1 recompute, and padded-column masking (200 rows, 128-lane
    #    tiles -> 2 tiles, ragged)
    x_big = jax.random.normal(kx2, (200, in_dim), jnp.float32)
    out_big = net_forward(x_big, w1, b1, w2, b2, block_cols=128)
    jax.block_until_ready(out_big)
    assert out_big.shape == (200, out_dim)
    assert bool(jnp.allclose(out_big, reference(x_big), atol=5e-3))
    assert bool(jnp.allclose(jnp.sum(out_big, axis=0),
                             jnp.ones((out_dim,)), atol=1e-3))

    print("KERNEL_OK")
</pallas_src>

<mosaic_0001>
module attributes {stable_mosaic.version = 11 : i64} {
  func.func @_single_tile_kernel(%arg0: memref<6x8xf32, #tpu.memory_space<vmem>>, %arg1: memref<32x6xf32, #tpu.memory_space<vmem>>, %arg2: memref<32x1xf32, #tpu.memory_space<vmem>>, %arg3: memref<8x32xf32, #tpu.memory_space<vmem>>, %arg4: memref<8x1xf32, #tpu.memory_space<vmem>>, %arg5: memref<8x8xf32, #tpu.memory_space<vmem>>) attributes {dimension_semantics = [], scalar_prefetch = 0 : i64, scratch_operands = 0 : i64, tpu.core_type = #tpu.core_type<tc>} {
    %c0 = arith.constant 0 : index
    %c0_0 = arith.constant 0 : index
    %0 = vector.load %arg1[%c0, %c0_0] : memref<32x6xf32, #tpu.memory_space<vmem>>, vector<32x6xf32>
    %c0_1 = arith.constant 0 : index
    %c0_2 = arith.constant 0 : index
    %1 = vector.load %arg0[%c0_1, %c0_2] : memref<6x8xf32, #tpu.memory_space<vmem>>, vector<6x8xf32>
    %cst = arith.constant dense<0.000000e+00> : vector<32x8xf32>
    %2 = tpu.matmul %0, %1, %cst {dimension_numbers = #tpu.dot_dimension_numbers<[1], [0], [0], [1], [0, 0, 1, 1], [], []>} : vector<32x6xf32>, vector<6x8xf32>, vector<32x8xf32> -> vector<32x8xf32>
    %c0_3 = arith.constant 0 : index
    %c0_4 = arith.constant 0 : index
    %3 = vector.load %arg2[%c0_3, %c0_4] : memref<32x1xf32, #tpu.memory_space<vmem>>, vector<32x1xf32>
    %4 = vector.broadcast %3 : vector<32x1xf32> to vector<32x8xf32>
    %5 = arith.addf %2, %4 : vector<32x8xf32>
    %cst_5 = arith.constant 0.000000e+00 : f32
    %6 = vector.broadcast %cst_5 : f32 to vector<32x8xf32>
    %7 = arith.maximumf %5, %6 : vector<32x8xf32>
    %c0_6 = arith.constant 0 : index
    %c0_7 = arith.constant 0 : index
    %8 = vector.load %arg3[%c0_6, %c0_7] : memref<8x32xf32, #tpu.memory_space<vmem>>, vector<8x32xf32>
    %cst_8 = arith.constant dense<0.000000e+00> : vector<8x8xf32>
    %9 = tpu.matmul %8, %7, %cst_8 {dimension_numbers = #tpu.dot_dimension_numbers<[1], [0], [0], [1], [0, 0, 1, 1], [], []>} : vector<8x32xf32>, vector<32x8xf32>, vector<8x8xf32> -> vector<8x8xf32>
    %c0_9 = arith.constant 0 : index
    %c0_10 = arith.constant 0 : index
    %10 = vector.load %arg4[%c0_9, %c0_10] : memref<8x1xf32, #tpu.memory_space<vmem>>, vector<8x1xf32>
    %11 = vector.broadcast %10 : vector<8x1xf32> to vector<8x8xf32>
    %12 = arith.addf %9, %11 : vector<8x8xf32>
    %cst_11 = arith.constant dense<0xFF800000> : vector<8xf32>
    %13 = vector.multi_reduction <maximumf>, %12, %cst_11 [1] : vector<8x8xf32> to vector<8xf32>
    %14 = vector.shape_cast %13 : vector<8xf32> to vector<8x1xf32>
    %15 = vector.broadcast %14 : vector<8x1xf32> to vector<8x8xf32>
    %16 = arith.subf %12, %15 : vector<8x8xf32>
    %17 = math.exp %16 : vector<8x8xf32>
    %cst_12 = arith.constant dense<0.000000e+00> : vector<8xf32>
    %18 = vector.multi_reduction <add>, %17, %cst_12 [1] : vector<8x8xf32> to vector<8xf32>
    %19 = vector.shape_cast %18 : vector<8xf32> to vector<8x1xf32>
    %cst_13 = arith.constant 1.000000e+00 : f32
    %20 = vector.broadcast %cst_13 : f32 to vector<8x1xf32>
    %21 = arith.divf %20, %19 : vector<8x1xf32>
    %22 = vector.broadcast %21 : vector<8x1xf32> to vector<8x8xf32>
    %23 = arith.mulf %17, %22 : vector<8x8xf32>
    %c0_14 = arith.constant 0 : index
    %c0_15 = arith.constant 0 : index
    %24 = vector.load %arg5[%c0_14, %c0_15] : memref<8x8xf32, #tpu.memory_space<vmem>>, vector<8x8xf32>
    tpu.vector_store %arg5[%c0_14, %c0_15], %23 {strides = array<i32>} : memref<8x8xf32, #tpu.memory_space<vmem>>, vector<8x8xf32>,
    return
  }
}

</mosaic_0001>

<bundles_post_ra>
// kernel: tpu_custom_call.1
= control target key start
LH: loop header
LB: loop body
LE: loop exit
PB: predicated region body
PF: predicated region fallthrough
CT: control target
= control target key end

     0   :  { %vm63_vm0 = vcmask 1045504   ;;  %vm50_vm1 = vcmask 48128   ;;  %v341_v5 = vmov 0   ;;  %s428_s0 = inlined_call_operand.vmem [shape: f32[6,8], index: 0, kind: input, shape index: {}]   ;;  %s429_s1 = inlined_call_operand.vmem [shape: f32[32,6], index: 1, kind: input, shape index: {}]   ;;  %s430_s2 = inlined_call_operand.vmem [shape: f32[32,1], index: 2, kind: input, shape index: {}]   ;;  %s431_s3 = inlined_call_operand.vmem [shape: f32[8,32], index: 3, kind: input, shape index: {}]   ;;  %s432_s4 = inlined_call_operand.vmem [shape: f32[8,1], index: 4, kind: input, shape index: {}]   ;;  %s433_s5 = inlined_call_operand.hbm [shape: f32[8,8], index: 5, kind: output, shape index: {}]  }
   0x1   :  { %v25_v0 = vld [vmem:[%s428_s0] sm:$0x3f]  ;;  %v22_v2 = vld [vmem:[%s429_s1 + $0x8] sm:$0xff]  ;;  %v23_v3 = vld [vmem:[%s429_s1 + $0x10] sm:$0xff]  ;;  %311 = vset.pattern.permute.xlu0 %v341_v5 }
   0x2   :  { %v21_v1 = vld [vmem:[%s429_s1] sm:$0xff]  ;;  %281 = vmatprep.subr.msk.mxu0 %vm63_vm0, %v25_v0  ;;  %v28_v6 = vld [vmem:[%s430_s2 + $0x10] sm:$0xff] }
   0x3   :  { %283 = vmatprep.mubr.msk.f32.mxu0 %vm50_vm1, %v21_v1  ;;  %v26_v4 = vld [vmem:[%s430_s2] sm:$0xff]  ;;  %282 = vmatpush3.msk.msra.mxu0 %vm63_vm0, %v25_v0 }
   0x4   :  { %284 = vmatmul.mubr.msk.f32.vlgmr.msra.gmra.mrb[0].mxu0 %vm50_vm1, %v22_v2  ;;  %32 = vperm.xlu0 %311, %v26_v4  }
   0x5   :  { %10 = vsyncpa [#allocation3], 0  ;;  %286 = vmatprep.mubr.msk.f32.mxu0 %vm50_vm1, %v23_v3  ;;  %v24_v7 = vld [vmem:[%s429_s1 + $0x18] sm:$0xff]  ;;  %v27_v8 = vld [vmem:[%s430_s2 + $0x8] sm:$0xff]  ;;  %312 = vset.pattern.permute.xlu1 %v341_v5  ;;  %v342_v11 = vmov 0.0|0.0   ;;  %vm343_vm2 = vmmov 0  }
   0x6   :  { %42 = vperm.xlu1 %312, %v28_v6   ;;  %v29_v9 = vld [vmem:[%s430_s2 + $0x18] sm:$0xff]  ;;  %v157_v10 = vld [vmem:[%s432_s4] sm:$0xff]  ;;  %300 = vmatprep.subr.bf16.mxu1 %v342_v11  ;;  %v344_v12 = vmov 0.0   ;;  %vm163_vm3 = vcmask 261120   ;;  %vm237_vm4 = vcmask 64512  }
   0x7   :  { %297 = vmatprep.mubr.msk.f32.mxu1 %vm343_vm2, %v344_v12  ;;  %v156_v31 = vld [vmem:[%s431_s3] sm:$0xff]  ;;  %s345_s3 = smov [#allocation2]  }
   0x8   :  { %287 = vmatmul.mubr.msk.f32.gmra.mrb[2].mxu0 %vm50_vm1, %v24_v7  ;;  %37 = vperm.xlu0 %311, %v27_v8   ;;  %s257_s4 = sshll.u32 %s345_s3, 4  ;;  %s258_s4 = int_to_ptr.vmem [resolvable:$true] %s257_s4 }
   0x9   :  { %s317_s12 = scalar_lea.vmem %s258_s4, 128  ;;  %p322_p1 = scmp.lt.s32.totalorder %s258_s4, %s258_s4 }
   0xa   :  { %47 = vperm.xlu1 %312, %v29_v9   ;;  %p318_p0 = scmp.ne.s32.totalorder %s258_s4, %s317_s12  ;;  %p323_p2 = scmp.lt.s32.totalorder %s317_s12, %s317_s12 }
   0xc   :  { %160 = vperm.xlu0 %311, %v157_v10   ;;  %p324_p3 = por %p323_p2, %p322_p1 }
   0xe   :  { %p325_p4 = pnand %p324_p3, %p318_p0 }
  0x83   :  { %v33_v13 = vpop.permute.xlu0 %32 }
  0x85   :  { %v43_v14 = vpop.permute.xlu1 %42 }
  0x87   :  { %v38_v15 = vpop.permute.xlu0 %37 }
  0x89   :  { %v48_v21 = vpop.permute.xlu1 %47 }
  0x8b   :  { %v161_v32 = vpop.permute.xlu0 %160 }
  0xd7   :  { %v285_v16 = vpop.f32.mrb[0].mxu0 }
  0xd8   :  { %v139_v17 = vadd.f32 %v285_v16, %v38_v15  ;;  %v133_v18 = vpop.f32.mrb[1].mxu0 }
  0xd9   :  { %v134_v19 = vadd.f32 %v133_v18, %v33_v13 }
  0xda   :  { %v153_v20 = vmax.f32 %v139_v17, 0.0 }
  0xdb   :  { %v152_v22 = vmax.f32 %v134_v19, 0.0  ;;  %v288_v23 = vpop.f32.mrb[2].mxu0 }
  0xdc   :  { %v149_v24 = vadd.f32 %v288_v23, %v48_v21  ;;  %v143_v25 = vpop.f32.mrb[3].mxu0 }
  0xdd   :  { %v144_v26 = vadd.f32 %v143_v25, %v43_v14  ;;  %v301_v27 = vpack.c.bf16 %v153_v20, %v152_v22 }
  0xde   :  { %v155_v28 = vmax.f32 %v149_v24, 0.0 }
  0xdf   :  { %v154_v29 = vmax.f32 %v144_v26, 0.0  ;;  %302 = vmatpush3.bf16.msra.mxu1 %v301_v27 }
  0xe0   :  { %303 = vmatprep.subr.bf16.mxu1 %v342_v11 }
  0xe1   :  { %v304_v30 = vpack.c.bf16 %v155_v28, %v154_v29 }
  0xe3   :  { %305 = vmatpush3.bf16.msra.mxu1 %v304_v30 }
  0xe6   :  { %298 = vmatmul.mubr.msk.f32.vlgmr.msra.gmra.mrb[0].mxu1 %vm163_vm3, %v156_v31 }
 0x1b9   :  { %v233_v33 = vpop.f32.mrb[0].mxu1 }
 0x1ba   :  { %v234_v34 = vadd.f32 %v233_v33, %v161_v32  ;;  %v299_v35 = vpop.f32.mrb[1].mxu1 }
 0x1bc   :  { %v238_v36 = vsel %vm237_vm4, %v234_v34, -inf }
 0x1bd   :  { %239 = vmax.xlane.f32.xlu1 %v238_v36 }
 0x24a   :  { %v240_v37 = vpop.xlane.xlu1 %239 }
 0x24b   :  { %v241_v38 = vsub.f32 %v234_v34, %v240_v37 }
 0x24d   :  { %v242_v39 = vmul.f32 1.442695, %v241_v38 }
 0x24f   :  { %313 = vpow2.f32 %v242_v39 }
 0x259   :  { %v314_v40 = vpop.eup %313 }
 0x25a   :  { %v244_v41 = vsel %vm237_vm4, %v314_v40, 0.0 }
 0x25b   :  { %245 = vadd.xlane.f32.xlu0 %v244_v41 }
 0x2e8   :  { %v246_v42 = vpop.xlane.xlu0 %245 }
 0x2e9   :  { %315 = vrcp.f32 %v246_v42 }
 0x2f3   :  { %v316_v43 = vpop.eup %315 }
 0x2f4   :  { %v249_v44 = vmul.f32 %v316_v43, %v314_v40 }
 0x2f6   :  { %250 = vst.msk [vmem:[#allocation2] sm:$0xff] %vm237_vm4, %v249_v44 }
 0x2f7   :  { %328 = shalt.err (!%p325_p4)
}
 0x2f8   :  { %s329_s15 = scalar_lea.hbm %s433_s5, 128 }
 0x2f9   :  { %p330_p5 = scmp.ne.s32.totalorder %s433_s5, %s329_s15  ;;  %p333_p6 = scmp.lt.u32.totalorder %s329_s15, %s433_s5 }
 0x2fb   :  { %p335_p7 = pnand %p333_p6, %p330_p5 }
 0x2fd   :  { %338 = shalt.err (!%p335_p7)
}
 0x2fe   :  { %260 = dma.vmem_to_hbm [thread:$0]  %s258_s4, 128, %s433_s5, [#allocation3]  }
 0x2ff   :  { %339 = dma.done.wait [#allocation3], 128  }
 0x300   :  { %340 = vsyncadd [#allocation3], 4294967168 }
 0x301   :  { %264 = vsyncpa [#allocation3], 1 }

</bundles_post_ra>
